<compile_context>
chip_gen: v7x
topology: tpu7x:2x2x1
jax: 0.10.0
libtpu: 0.0.40
codegen_flags: <defaults>
</compile_context>

<pallas_src>
import jax
import jax.numpy as jnp
from jax.experimental import pallas as pl
from jax.experimental.pallas import tpu as pltpu


def _round_up(v, m):
    return ((v + m - 1) // m) * m


def _num_tensorcores_per_chip():
    """Best-effort detection of megacore chips (2 TensorCores per chip)."""
    try:
        kind = (jax.devices()[0].device_kind or "").lower()
    except Exception:
        return 1
    for tag in ("v7", "v4", "v5p"):
        if tag in kind:
            return 2
    return 1


_MAX_TILE_B = 8192  # lane columns per grid step; ~2 MiB VMEM at f32, safe everywhere


def _pick_tile_b(B_lane, n_cores):
    tile_b = min(B_lane, _MAX_TILE_B)
    if n_cores >= 2 and B_lane >= 256:
        # Guarantee >=2 "parallel" grid steps so both TensorCores get work.
        tile_b = min(tile_b, _round_up(pl.cdiv(B_lane, 2), 128))
    return tile_b


def _make_mlp_kernel(bf16_tanh: bool):
    def _mlp_kernel(xt_ref,
                    w1_ref, b1_ref,
                    w2_ref, b2_ref,
                    w3_ref, b3_ref,
                    w4_ref, b4_ref,
                    o_ref):
        """Fused 4-layer MLP; activations laid out [features, batch] (batch on lanes)."""
        xt = xt_ref[...]                                   # [2, tile_b]
        w1 = w1_ref[...]                                   # [NN, 2]

        # Layer 1 (K=2): two broadcast FMAs on the VPU instead of a >98%-padded
        # MXU pass.  h1[n, b] = w1[n,0]*x[b,0] + w1[n,1]*x[b,1] + b1[n]
        h = jnp.tanh(w1[:, 0:1] * xt[0:1, :]
                     + w1[:, 1:2] * xt[1:2, :]
                     + b1_ref[...])                        # [NN, tile_b]

        # Layers 2 & 3: lane-dense MXU matmuls with f32 accumulation; tanh on the
        # EUP.  Optional bf16 tanh (v6e/v7x: ~2x EUP rate); off by default so the
        # default path keeps f32 numerics and v5e avoids useless casts.
        z2 = (jnp.dot(w2_ref[...], h, preferred_element_type=jnp.float32)
              + b2_ref[...])                               # [NN/2, tile_b]
        if bf16_tanh:
            h = jnp.tanh(z2.astype(jnp.bfloat16)).astype(jnp.float32)
        else:
            h = jnp.tanh(z2)

        z3 = (jnp.dot(w3_ref[...], h, preferred_element_type=jnp.float32)
              + b3_ref[...])                               # [NN/2, tile_b]
        if bf16_tanh:
            h = jnp.tanh(z3.astype(jnp.bfloat16)).astype(jnp.float32)
        else:
            h = jnp.tanh(z3)

        # Layer 4 (N=1): elementwise multiply + sublane reduce (VPU + XLU) instead
        # of an MXU pass; bias is a scalar read from SMEM (scalar path, free).
        o_ref[...] = (jnp.sum(w4_ref[...] * h, axis=0, keepdims=True)
                      + b4_ref[0])                         # [1, tile_b]

    return _mlp_kernel


def _fused_mlp(xt_pad, params, tile_b, bf16_tanh):
    """xt_pad: [2, B_pad] with B_pad % tile_b == 0 and tile_b % 128 == 0."""
    w1, b1, w2, b2, w3, b3, w4, b4 = params
    B_pad = xt_pad.shape[1]
    num_tiles = B_pad // tile_b

    def full_block(arr):
        # Whole parameter array resident each grid step (constant index_map).
        # At NN=32 the full weight footprint is ~12 KB; if NN is ever scaled into
        # the MBs, add pipeline_mode=pl.Buffered(1) here (constant blocks don't
        # need double-buffering) to stay inside v7x's smaller VMEM.
        return pl.BlockSpec(arr.shape, lambda i: (0, 0))

    return pl.pallas_call(
        _make_mlp_kernel(bf16_tanh),
        out_shape=jax.ShapeDtypeStruct((1, B_pad), jnp.float32),
        grid_spec=pltpu.PrefetchScalarGridSpec(
            num_scalar_prefetch=0,
            grid=(num_tiles,),
            in_specs=[
                pl.BlockSpec((2, tile_b), lambda i: (0, i)),        # xT tile
                full_block(w1), full_block(b1),
                full_block(w2), full_block(b2),
                full_block(w3), full_block(b3),
                full_block(w4),
                pl.BlockSpec(memory_space=pltpu.MemorySpace.SMEM),  # b4 scalar
            ],
            out_specs=pl.BlockSpec((1, tile_b), lambda i: (0, i)),  # lane-dense
        ),
        compiler_params=pltpu.CompilerParams(
            dimension_semantics=("parallel",)),
    )(xt_pad, w1, b1, w2, b2, w3, b3, w4, b4)


def net_forward_lanes(xt, params, *, tile_b=None, bf16_tanh=False):
    """Hot path for callers that already hold batch on lanes.

    xt: [2, B] float32 -> [1, B] float32.  Skips the transpose HLOs of the
    convenience wrapper (relevant when the forward is called many times per
    PINN training step)."""
    B = xt.shape[1]
    if tile_b is None:
        B_lane = _round_up(B, 128)
        tile_b = _pick_tile_b(B_lane, _num_tensorcores_per_chip())
    else:
        # Guard: keep the lane dim a multiple of 128 (lane-dense, unmasked stores).
        tile_b = _round_up(int(tile_b), 128)

    num_tiles = pl.cdiv(B, tile_b)
    B_pad = num_tiles * tile_b
    if B_pad != B:
        # Padded lane columns compute tanh(bias) garbage; sliced off below.
        xt = jnp.pad(xt, ((0, 0), (0, B_pad - B)))

    out = _fused_mlp(xt, params, tile_b, bf16_tanh)
    return out[:, :B] if B_pad != B else out


def net_forward(x, params, *, tile_b=None, bf16_tanh=False):
    """Convenience wrapper matching the PyTorch layout: x [B, 2] -> [B, 1]."""
    return net_forward_lanes(x.T, params, tile_b=tile_b, bf16_tanh=bf16_tanh).T


def init_params(key, NN):
    """Deterministic init mimicking PyTorch nn.Linear defaults
    (U(-1/sqrt(fan_in), 1/sqrt(fan_in)) for weights and biases).

    Layout: w1 [NN,2], w2 [NN/2,NN], w3 [NN/2,NN/2] are [out, in] (PyTorch
    native); biases are [out, 1] columns so they broadcast over the lane
    (batch) axis; w4 is stored as an [NN/2, 1] column (transpose of PyTorch's
    [1, NN/2]) and b4 is a (1,) scalar kept in SMEM."""
    H = NN // 2
    params = []
    for li, (fan_in, fan_out) in enumerate([(2, NN), (NN, H), (H, H), (H, 1)]):
        key, kw, kb = jax.random.split(key, 3)
        bound = 1.0 / jnp.sqrt(float(fan_in))
        if li < 3:
            w = jax.random.uniform(kw, (fan_out, fan_in), jnp.float32, -bound, bound)
            b = jax.random.uniform(kb, (fan_out, 1), jnp.float32, -bound, bound)
        else:  # output layer stored as a column + scalar bias
            w = jax.random.uniform(kw, (fan_in, fan_out), jnp.float32, -bound, bound)
            b = jax.random.uniform(kb, (fan_out,), jnp.float32, -bound, bound)
        params += [w, b]
    return tuple(params)


def net_reference(x, params):
    """Pure-JAX reference (matches torch semantics: x @ W.T + b)."""
    w1, b1, w2, b2, w3, b3, w4, b4 = params
    h = jnp.tanh(x @ w1.T + b1.T)
    h = jnp.tanh(h @ w2.T + b2.T)
    h = jnp.tanh(h @ w3.T + b3.T)
    return h @ w4 + b4          # w4 already stored as [H, 1]


if __name__ == "__main__":
    NN = 32          # hidden width of Net(NN); hidden layers are NN/2 = 16

    key = jax.random.PRNGKey(0)
    k_params, k_x1, k_x2 = jax.random.split(key, 3)
    params = init_params(k_params, NN)

    fwd = jax.jit(net_forward)

    # Small batch (single grid step on every generation).
    B1 = 128
    x1 = jax.random.uniform(k_x1, (B1, 2), jnp.float32)
    out1 = jax.block_until_ready(fwd(x1, params))
    ref1 = net_reference(x1, params)
    assert out1.shape == (B1, 1)
    assert jnp.allclose(out1, ref1, atol=1e-5, rtol=1e-5), "mismatch vs reference (B=128)"

    # Ragged batch: exercises lane padding, tail slicing and (on megacore chips)
    # the >=2-step parallel grid.
    B2 = 1000
    x2 = jax.random.uniform(k_x2, (B2, 2), jnp.float32)
    out2 = jax.block_until_ready(fwd(x2, params))
    ref2 = net_reference(x2, params)
    assert out2.shape == (B2, 1)
    assert jnp.allclose(out2, ref2, atol=1e-5, rtol=1e-5), "mismatch vs reference (B=1000)"

    print("KERNEL_OK")
</pallas_src>

<mosaic_0001>
module attributes {stable_mosaic.version = 11 : i64} {
  func.func @_mlp_kernel(%arg0: i32, %arg1: memref<2x128xf32, #tpu.memory_space<vmem>>, %arg2: memref<32x2xf32, #tpu.memory_space<vmem>>, %arg3: memref<32x1xf32, #tpu.memory_space<vmem>>, %arg4: memref<16x32xf32, #tpu.memory_space<vmem>>, %arg5: memref<16x1xf32, #tpu.memory_space<vmem>>, %arg6: memref<16x16xf32, #tpu.memory_space<vmem>>, %arg7: memref<16x1xf32, #tpu.memory_space<vmem>>, %arg8: memref<16x1xf32, #tpu.memory_space<vmem>>, %arg9: memref<1xf32, #tpu.memory_space<smem>>, %arg10: memref<1x128xf32, #tpu.memory_space<vmem>>) attributes {dimension_semantics = [#tpu.dimension_semantics<parallel>], iteration_bounds = array<i64: 1>, scalar_prefetch = 0 : i64, scratch_operands = 0 : i64, tpu.core_type = #tpu.core_type<tc>, window_params = [{transform_indices = @transform_0, window_bounds = array<i64: 2, 128>}, {pipeline_mode = #tpu.pipeline_mode<synchronous>, transform_indices = @transform_1, window_bounds = array<i64: 32, 2>}, {pipeline_mode = #tpu.pipeline_mode<synchronous>, transform_indices = @transform_2, window_bounds = array<i64: 32, 1>}, {pipeline_mode = #tpu.pipeline_mode<synchronous>, transform_indices = @transform_3, window_bounds = array<i64: 16, 32>}, {pipeline_mode = #tpu.pipeline_mode<synchronous>, transform_indices = @transform_4, window_bounds = array<i64: 16, 1>}, {pipeline_mode = #tpu.pipeline_mode<synchronous>, transform_indices = @transform_5, window_bounds = array<i64: 16, 16>}, {pipeline_mode = #tpu.pipeline_mode<synchronous>, transform_indices = @transform_6, window_bounds = array<i64: 16, 1>}, {pipeline_mode = #tpu.pipeline_mode<synchronous>, transform_indices = @transform_7, window_bounds = array<i64: 16, 1>}, {transform_indices = @transform_8, window_bounds = array<i64: 1>}, {transform_indices = @transform_9, window_bounds = array<i64: 1, 128>}]} {
    %c0 = arith.constant 0 : index
    %c0_0 = arith.constant 0 : index
    %0 = vector.load %arg1[%c0, %c0_0] : memref<2x128xf32, #tpu.memory_space<vmem>>, vector<2x128xf32>
    %c0_1 = arith.constant 0 : index
    %c0_2 = arith.constant 0 : index
    %1 = vector.load %arg2[%c0_1, %c0_2] : memref<32x2xf32, #tpu.memory_space<vmem>>, vector<32x2xf32>
    %2 = vector.extract_strided_slice %1 {offsets = [0, 0], sizes = [32, 1], strides = [1, 1]} : vector<32x2xf32> to vector<32x1xf32>
    %3 = vector.extract_strided_slice %0 {offsets = [0, 0], sizes = [1, 128], strides = [1, 1]} : vector<2x128xf32> to vector<1x128xf32>
    %4 = vector.broadcast %2 : vector<32x1xf32> to vector<32x128xf32>
    %5 = vector.broadcast %3 : vector<1x128xf32> to vector<32x128xf32>
    %6 = arith.mulf %4, %5 : vector<32x128xf32>
    %7 = vector.extract_strided_slice %1 {offsets = [0, 1], sizes = [32, 1], strides = [1, 1]} : vector<32x2xf32> to vector<32x1xf32>
    %8 = vector.extract_strided_slice %0 {offsets = [1, 0], sizes = [1, 128], strides = [1, 1]} : vector<2x128xf32> to vector<1x128xf32>
    %9 = vector.broadcast %7 : vector<32x1xf32> to vector<32x128xf32>
    %10 = vector.broadcast %8 : vector<1x128xf32> to vector<32x128xf32>
    %11 = arith.mulf %9, %10 : vector<32x128xf32>
    %12 = arith.addf %6, %11 : vector<32x128xf32>
    %c0_3 = arith.constant 0 : index
    %c0_4 = arith.constant 0 : index
    %13 = vector.load %arg3[%c0_3, %c0_4] : memref<32x1xf32, #tpu.memory_space<vmem>>, vector<32x1xf32>
    %14 = vector.broadcast %13 : vector<32x1xf32> to vector<32x128xf32>
    %15 = arith.addf %12, %14 : vector<32x128xf32>
    %16 = math.tanh %15 : vector<32x128xf32>
    %c0_5 = arith.constant 0 : index
    %c0_6 = arith.constant 0 : index
    %17 = vector.load %arg4[%c0_5, %c0_6] : memref<16x32xf32, #tpu.memory_space<vmem>>, vector<16x32xf32>
    %cst = arith.constant dense<0.000000e+00> : vector<16x128xf32>
    %18 = tpu.matmul %17, %16, %cst {dimension_numbers = #tpu.dot_dimension_numbers<[1], [0], [0], [1], [0, 0, 1, 1], [], []>} : vector<16x32xf32>, vector<32x128xf32>, vector<16x128xf32> -> vector<16x128xf32>
    %c0_7 = arith.constant 0 : index
    %c0_8 = arith.constant 0 : index
    %19 = vector.load %arg5[%c0_7, %c0_8] : memref<16x1xf32, #tpu.memory_space<vmem>>, vector<16x1xf32>
    %20 = vector.broadcast %19 : vector<16x1xf32> to vector<16x128xf32>
    %21 = arith.addf %18, %20 : vector<16x128xf32>
    %22 = math.tanh %21 : vector<16x128xf32>
    %c0_9 = arith.constant 0 : index
    %c0_10 = arith.constant 0 : index
    %23 = vector.load %arg6[%c0_9, %c0_10] : memref<16x16xf32, #tpu.memory_space<vmem>>, vector<16x16xf32>
    %cst_11 = arith.constant dense<0.000000e+00> : vector<16x128xf32>
    %24 = tpu.matmul %23, %22, %cst_11 {dimension_numbers = #tpu.dot_dimension_numbers<[1], [0], [0], [1], [0, 0, 1, 1], [], []>} : vector<16x16xf32>, vector<16x128xf32>, vector<16x128xf32> -> vector<16x128xf32>
    %c0_12 = arith.constant 0 : index
    %c0_13 = arith.constant 0 : index
    %25 = vector.load %arg7[%c0_12, %c0_13] : memref<16x1xf32, #tpu.memory_space<vmem>>, vector<16x1xf32>
    %26 = vector.broadcast %25 : vector<16x1xf32> to vector<16x128xf32>
    %27 = arith.addf %24, %26 : vector<16x128xf32>
    %28 = math.tanh %27 : vector<16x128xf32>
    %c0_14 = arith.constant 0 : index
    %c0_15 = arith.constant 0 : index
    %29 = vector.load %arg8[%c0_14, %c0_15] : memref<16x1xf32, #tpu.memory_space<vmem>>, vector<16x1xf32>
    %30 = vector.broadcast %29 : vector<16x1xf32> to vector<16x128xf32>
    %31 = arith.mulf %30, %28 : vector<16x128xf32>
    %cst_16 = arith.constant dense<0.000000e+00> : vector<128xf32>
    %32 = vector.multi_reduction <add>, %31, %cst_16 [0] : vector<16x128xf32> to vector<128xf32>
    %33 = vector.shape_cast %32 : vector<128xf32> to vector<1x128xf32>
    %c0_17 = arith.constant 0 : index
    %34 = memref.load %arg9[%c0_17] : memref<1xf32, #tpu.memory_space<smem>>
    %35 = vector.broadcast %34 : f32 to vector<1x128xf32>
    %36 = arith.addf %33, %35 : vector<1x128xf32>
    %c0_18 = arith.constant 0 : index
    %c0_19 = arith.constant 0 : index
    %37 = vector.load %arg10[%c0_18, %c0_19] : memref<1x128xf32, #tpu.memory_space<vmem>>, vector<1x128xf32>
    tpu.vector_store %arg10[%c0_18, %c0_19], %36 {strides = array<i32>} : memref<1x128xf32, #tpu.memory_space<vmem>>, vector<1x128xf32>,
    return
  }
  func.func @transform_0(%arg0: i32) -> (i32, i32) {
    %c0_i32 = arith.constant 0 : i32
    %c0_i32_0 = arith.constant 0 : i32
    return %c0_i32, %arg0 : i32, i32
  }
  func.func @transform_1(%arg0: i32) -> (i32, i32) {
    %c0_i32 = arith.constant 0 : i32
    %c0_i32_0 = arith.constant 0 : i32
    %c0_i32_1 = arith.constant 0 : i32
    return %c0_i32, %c0_i32_0 : i32, i32
  }
  func.func @transform_2(%arg0: i32) -> (i32, i32) {
    %c0_i32 = arith.constant 0 : i32
    %c0_i32_0 = arith.constant 0 : i32
    %c0_i32_1 = arith.constant 0 : i32
    return %c0_i32, %c0_i32_0 : i32, i32
  }
  func.func @transform_3(%arg0: i32) -> (i32, i32) {
    %c0_i32 = arith.constant 0 : i32
    %c0_i32_0 = arith.constant 0 : i32
    %c0_i32_1 = arith.constant 0 : i32
    return %c0_i32, %c0_i32_0 : i32, i32
  }
  func.func @transform_4(%arg0: i32) -> (i32, i32) {
    %c0_i32 = arith.constant 0 : i32
    %c0_i32_0 = arith.constant 0 : i32
    %c0_i32_1 = arith.constant 0 : i32
    return %c0_i32, %c0_i32_0 : i32, i32
  }
  func.func @transform_5(%arg0: i32) -> (i32, i32) {
    %c0_i32 = arith.constant 0 : i32
    %c0_i32_0 = arith.constant 0 : i32
    %c0_i32_1 = arith.constant 0 : i32
    return %c0_i32, %c0_i32_0 : i32, i32
  }
  func.func @transform_6(%arg0: i32) -> (i32, i32) {
    %c0_i32 = arith.constant 0 : i32
    %c0_i32_0 = arith.constant 0 : i32
    %c0_i32_1 = arith.constant 0 : i32
    return %c0_i32, %c0_i32_0 : i32, i32
  }
  func.func @transform_7(%arg0: i32) -> (i32, i32) {
    %c0_i32 = arith.constant 0 : i32
    %c0_i32_0 = arith.constant 0 : i32
    %c0_i32_1 = arith.constant 0 : i32
    return %c0_i32, %c0_i32_0 : i32, i32
  }
  func.func @transform_8(%arg0: i32) -> i32 {
    %c0_i32 = arith.constant 0 : i32
    %c0_i32_0 = arith.constant 0 : i32
    return %c0_i32 : i32
  }
  func.func @transform_9(%arg0: i32) -> (i32, i32) {
    %c0_i32 = arith.constant 0 : i32
    %c0_i32_0 = arith.constant 0 : i32
    return %c0_i32, %arg0 : i32, i32
  }
}

</mosaic_0001>

<bundles_post_ra>
// kernel: net_forward.1
= control target key start
LH: loop header
LB: loop body
LE: loop exit
PB: predicated region body
PF: predicated region fallthrough
CT: control target
= control target key end

     0   :  { %v455_v2 = vmov 1   ;;  %s584_s0 = inlined_call_operand.vmem [shape: f32[2,128], index: 0, kind: input, shape index: {}]   ;;  %s585_s1 = inlined_call_operand.vmem [shape: f32[32,2], index: 1, kind: input, shape index: {}]   ;;  %s586_s2 = inlined_call_operand.vmem [shape: f32[32,1], index: 2, kind: input, shape index: {}]   ;;  %s587_s3 = inlined_call_operand.vmem [shape: f32[16,32], index: 3, kind: input, shape index: {}]   ;;  %s588_s4 = inlined_call_operand.vmem [shape: f32[16,1], index: 4, kind: input, shape index: {}]   ;;  %s589_s5 = inlined_call_operand.vmem [shape: f32[16,16], index: 5, kind: input, shape index: {}]   ;;  %s590_s6 = inlined_call_operand.vmem [shape: f32[16,1], index: 6, kind: input, shape index: {}]   ;;  %s591_s7 = inlined_call_operand.vmem [shape: f32[16,1], index: 7, kind: input, shape index: {}]   ;;  %s592_s8 = inlined_call_operand.<no memory space> [shape: f32[1], index: 8, kind: input, shape index: {}]   ;;  %s593_s9 = inlined_call_operand.hbm [shape: f32[1,128], index: 9, kind: output, shape index: {}]  }
   0x1   :  { %v37_v0 = vld [vmem:[%s585_s1 + $0x10] sm:$0xff]  ;;  %v35_v1 = vld [vmem:[%s585_s1] sm:$0xff]  ;;  %411 = vset.pattern.permute.xlu0 %v455_v2  ;;  %409 = vset.pattern.permute.xlu1 %v455_v2  ;;  %v36_v3 = vld [vmem:[%s585_s1 + $0x8] sm:$0xff] }
   0x2   :  { %76 = vperm.xlu0 %411, %v37_v0   ;;  %68 = vperm.xlu1 %409, %v35_v1  }
   0x3   :  { %15 = vsyncpa [#allocation4], 0  ;;  %v456_v4 = vmov 0   ;;  %v38_v5 = vld [vmem:[%s585_s1 + $0x18] sm:$0xff]  ;;  %v96_v6 = vld [vmem:[%s586_s2 + $0x8] sm:$0xff]  ;;  %vm141_vm0 = vcmask 261120   ;;  %v59_v17 = vlaneseq }
   0x4   :  { %v95_v7 = vld [vmem:[%s586_s2] sm:$0xff]  ;;  %v97_v9 = vld [vmem:[%s586_s2 + $0x10] sm:$0xff]  ;;  %v98_v11 = vld [vmem:[%s586_s2 + $0x18] sm:$0xff]  ;;  %vm239_vm1 = vcmask 130048   ;;  %s457_s20 = smov [#allocation3]  }
   0x5   :  { %v129_v8 = vld [vmem:[%s588_s4] sm:$0xff]  ;;  %v130_v13 = vld [vmem:[%s588_s4 + $0x8] sm:$0xff]  ;;  %v60_v20 = vshrl.u32 %v59_v17, 7  ;;  %s354_s21 = sshll.u32 %s457_s20, 4  ;;  %s355_s21 = int_to_ptr.vmem [resolvable:$true] %s354_s21 }
   0x6   :  { %412 = vset.pattern.permute.xlu0 %v456_v4  ;;  %72 = vperm.xlu1 %409, %v36_v3   ;;  %v227_v10 = vld [vmem:[%s590_s6] sm:$0xff]  ;;  %v228_v14 = vld [vmem:[%s590_s6 + $0x8] sm:$0xff]  ;;  %s431_s22 = scalar_lea.vmem %s355_s21, 16  ;;  %s435_s1 = scalar_lea.vmem %s355_s21, 32 }
   0x7   :  { %41 = vperm.xlu0 %412, %v35_v1   ;;  %v323_v12 = vld [vmem:[%s591_s7] sm:$0xff]  ;;  %v324_v15 = vld [vmem:[%s591_s7 + $0x8] sm:$0xff]  ;;  %v61_v23 = vsub.s32 0, %v60_v20  ;;  %v85_v24 = vsub.s32 1, %v60_v20  ;;  %p432_p0 = scmp.ne.s32.totalorder %s355_s21, %s431_s22  ;;  %p436_p1 = scmp.lt.s32.totalorder %s355_s21, %s355_s21 }
   0x8   :  { %v127_v16 = vld [vmem:[%s587_s3] sm:$0xff]  ;;  %v128_v58 = vld [vmem:[%s587_s3 + $0x8] sm:$0xff]  ;;  %p437_p2 = scmp.lt.s32.totalorder %s435_s1, %s431_s22 }
   0x9   :  { %384 = vmatprep.mubr.msk.f32.mxu0 %vm141_vm0, %v127_v16  ;;  %v34_v25 = vld [vmem:[%s584_s0] sm:$0x3] }
   0xa   :  { %410 = vset.pattern.permute.xlu1 %v456_v4  ;;  %v62_v28 = vrot.slane %v34_v25, %v61_v23  ;;  %v86_v29 = vrot.slane %v34_v25, %v85_v24  ;;  %v225_v59 = vld [vmem:[%s589_s5] sm:$0xff]  ;;  %v345_v24 = vstv %s592_s8  ;;  %p438_p3 = por %p437_p2, %p436_p1 }
   0xb   :  { %46 = vperm.xlu0 %412, %v36_v3   ;;  %56 = vperm.xlu1 %410, %v38_v5  }
   0xc   :  { %391 = vmatprep.mubr.msk.f32.mxu1 %vm239_vm1, %v225_v59  ;;  %p439_p4 = pnand %p438_p3, %p432_p0 }
   0xf   :  { %51 = vperm.xlu0 %412, %v37_v0   ;;  %413 = vset.pattern.permute.xlu1 %v455_v2 }
  0x10   :  { %80 = vperm.xlu1 %413, %v38_v5   ;;  %v226_v5 = vld [vmem:[%s589_s5 + $0x8] sm:$0xff] }
  0x13   :  { %106 = vperm.xlu0 %412, %v96_v6  }
  0x14   :  { %414 = vset.pattern.permute.xlu1 %v456_v4 }
  0x15   :  { %101 = vperm.xlu1 %414, %v95_v7  }
  0x17   :  { %133 = vperm.xlu0 %412, %v129_v8  }
  0x19   :  { %111 = vperm.xlu1 %414, %v97_v9  }
  0x1b   :  { %231 = vperm.xlu0 %412, %v227_v10  }
  0x1d   :  { %116 = vperm.xlu1 %414, %v98_v11  }
  0x1f   :  { %327 = vperm.xlu0 %412, %v323_v12  }
  0x21   :  { %138 = vperm.xlu1 %414, %v130_v13  }
  0x25   :  { %236 = vperm.xlu1 %414, %v228_v14  }
  0x29   :  { %332 = vperm.xlu1 %414, %v324_v15  }
  0x81   :  { %v69_v18 = vpop.permute.xlu1 %68  ;;  %v77_v19 = vpop.permute.xlu0 %76 }
  0x82   :  { %v87_v35 = vmul.f32 %v86_v29, %v69_v18  ;;  %v89_v43 = vmul.f32 %v86_v29, %v77_v19 }
  0x85   :  { %v73_v21 = vpop.permute.xlu1 %72 }
  0x86   :  { %v42_v22 = vpop.permute.xlu0 %41  ;;  %v88_v32 = vmul.f32 %v86_v29, %v73_v21 }
  0x87   :  { %v63_v33 = vmul.f32 %v62_v28, %v42_v22 }
  0x89   :  { %v91_v39 = vadd.f32 %v87_v35, %v63_v33 }
  0x8a   :  { %v47_v26 = vpop.permute.xlu0 %46  ;;  %v57_v27 = vpop.permute.xlu1 %56 }
  0x8b   :  { %v64_v30 = vmul.f32 %v62_v28, %v47_v26  ;;  %v66_v47 = vmul.f32 %v62_v28, %v57_v27 }
  0x8d   :  { %v92_v36 = vadd.f32 %v88_v32, %v64_v30 }
  0x8e   :  { %v52_v31 = vpop.permute.xlu0 %51 }
  0x8f   :  { %v81_v34 = vpop.permute.xlu1 %80  ;;  %v65_v40 = vmul.f32 %v62_v28, %v52_v31 }
  0x90   :  { %v90_v44 = vmul.f32 %v86_v29, %v81_v34 }
  0x91   :  { %v93_v46 = vadd.f32 %v89_v43, %v65_v40 }
  0x92   :  { %v107_v37 = vpop.permute.xlu0 %106  ;;  %v94_v49 = vadd.f32 %v90_v44, %v66_v47 }
  0x93   :  { %v120_v38 = vadd.f32 %v107_v37, %v92_v36 }
  0x94   :  { %v102_v41 = vpop.permute.xlu1 %101 }
  0x95   :  { %v119_v42 = vadd.f32 %v102_v41, %v91_v39  ;;  %415 = vtanh.f32 %v120_v38 }
  0x96   :  { %v134_v62 = vpop.permute.xlu0 %133 }
  0x97   :  { %417 = vtanh.f32 %v119_v42 }
  0x98   :  { %v112_v45 = vpop.permute.xlu1 %111 }
  0x99   :  { %v121_v48 = vadd.f32 %v112_v45, %v93_v46 }
  0x9a   :  { %v232_v8 = vpop.permute.xlu0 %231 }
  0x9b   :  { %419 = vtanh.f32 %v121_v48 }
  0x9c   :  { %v117_v50 = vpop.permute.xlu1 %116 }
  0x9d   :  { %v122_v51 = vadd.f32 %v117_v50, %v94_v49 }
  0x9e   :  { %v328_v15 = vpop.permute.xlu0 %327 }
  0x9f   :  { %421 = vtanh.f32 %v122_v51  ;;  %v416_v52 = vpop.eup %415 }
  0xa0   :  { %v139_v60 = vpop.permute.xlu1 %138 }
  0xa1   :  { %v418_v53 = vpop.eup %417 }
  0xa2   :  { %v394_v54 = vpack.c.bf16 %v416_v52, %v418_v53 }
  0xa4   :  { %395 = vmatprep.subr.bf16.mxu0 %v394_v54  ;;  %v237_v6 = vpop.permute.xlu1 %236 }
  0xa5   :  { %397 = vmatpush3.bf16.msra.mxu0 %v394_v54  ;;  %v420_v55 = vpop.eup %419 }
  0xa8   :  { %v333_v13 = vpop.permute.xlu1 %332 }
  0xa9   :  { %v422_v56 = vpop.eup %421 }
  0xaa   :  { %v398_v57 = vpack.c.bf16 %v422_v56, %v420_v55 }
  0xac   :  { %399 = vmatprep.subr.bf16.mxu0 %v398_v57 }
  0xad   :  { %401 = vmatpush3.bf16.msra.mxu0 %v398_v57 }
  0xb0   :  { %385 = vmatmul.mubr.msk.f32.vlgmr.msra.gmra.mrb[0].mxu0 %vm141_vm0, %v128_v58 }
 0x183   :  { %v386_v61 = vpop.f32.mrb[0].mxu0 }
 0x184   :  { %v220_v63 = vadd.f32 %v386_v61, %v139_v60  ;;  %v214_v0 = vpop.f32.mrb[1].mxu0 }
 0x185   :  { %v215_v1 = vadd.f32 %v214_v0, %v134_v62 }
 0x186   :  { %423 = vtanh.f32 %v220_v63 }
 0x187   :  { %425 = vtanh.f32 %v215_v1 }
 0x190   :  { %v424_v2 = vpop.eup %423 }
 0x191   :  { %v426_v3 = vpop.eup %425 }
 0x192   :  { %v402_v4 = vpack.c.bf16 %v424_v2, %v426_v3 }
 0x194   :  { %403 = vmatprep.subr.bf16.mxu1 %v402_v4 }
 0x195   :  { %405 = vmatpush3.bf16.msra.mxu1 %v402_v4 }
 0x198   :  { %392 = vmatmul.mubr.msk.f32.vlgmr.msra.gmra.mrb[0].mxu1 %vm239_vm1, %v226_v5 }
 0x26b   :  { %v393_v7 = vpop.f32.mrb[0].mxu1 }
 0x26c   :  { %v318_v9 = vadd.f32 %v393_v7, %v237_v6  ;;  %v312_v10 = vpop.f32.mrb[1].mxu1 }
 0x26d   :  { %v313_v11 = vadd.f32 %v312_v10, %v232_v8 }
 0x26e   :  { %427 = vtanh.f32 %v318_v9 }
 0x26f   :  { %429 = vtanh.f32 %v313_v11 }
 0x278   :  { %v428_v12 = vpop.eup %427 }
 0x279   :  { %v430_v14 = vpop.eup %429  ;;  %v336_v16 = vmul.f32 %v428_v12, %v333_v13 }
 0x27a   :  { %v335_v17 = vmul.f32 %v430_v14, %v328_v15 }
 0x27c   :  { %v337_v18 = vadd.f32 %v336_v16, %v335_v17 }
 0x27e   :  { %v338_v19 = vrot.slane %v337_v18, 4 }
 0x280   :  { %v339_v20 = vadd.f32 %v338_v19, %v337_v18 }
 0x282   :  { %v340_v21 = vrot.slane %v339_v20, 2 }
 0x284   :  { %v341_v22 = vadd.f32 %v340_v21, %v339_v20 }
 0x286   :  { %v342_v23 = vrot.slane %v341_v22, 1 }
 0x288   :  { %v343_v25 = vadd.f32 %v342_v23, %v341_v22 }
 0x28a   :  { %v346_v26 = vadd.f32 %v345_v24, %v343_v25 }
 0x28c   :  { %347 = vst [vmem:[#allocation3] sm:$0x1] %v346_v26 }
 0x28d   :  { %442 = shalt.err (!%p439_p4)
}
 0x28e   :  { %s443_s25 = scalar_lea.hbm %s593_s9, 16 }
 0x28f   :  { %p444_p5 = scmp.ne.s32.totalorder %s593_s9, %s443_s25  ;;  %p447_p6 = scmp.lt.u32.totalorder %s443_s25, %s593_s9 }
 0x291   :  { %p449_p7 = pnand %p447_p6, %p444_p5 }
 0x293   :  { %452 = shalt.err (!%p449_p7)
}
 0x294   :  { %357 = dma.vmem_to_hbm [thread:$0]  %s355_s21, 16, %s593_s9, [#allocation4]  }
 0x295   :  { %453 = dma.done.wait [#allocation4], 16  }
 0x296   :  { %454 = vsyncadd [#allocation4], 4294967280 }
 0x297   :  { %361 = vsyncpa [#allocation4], 1 }

</bundles_post_ra>
